<compile_context>
chip_gen: v7x
topology: tpu7x:2x2x1
jax: 0.10.0
libtpu: 0.0.40
codegen_flags: <defaults>
</compile_context>

<pallas_src>
import functools

import jax
import jax.numpy as jnp
from jax.experimental import pallas as pl
from jax.experimental.pallas import tpu as pltpu


def _round_up(v, m):
    return ((v + m - 1) // m) * m


def _vmem_caps():
    """(physical VMEM per core, per-kernel budget) in bytes, generation aware.

    v7x: 64 MiB VMEM/TC -> ~48 MiB budget; v5e/v6e: 128 MiB -> ~80 MiB budget.
    Falls back to the conservative 64 MiB figure if the query is unavailable.
    """
    try:
        cap = int(getattr(pltpu.get_tpu_info(), "vmem_capacity_bytes", 0)) or 64 * 2**20
    except Exception:
        cap = 64 * 2**20
    return cap, min((cap * 3) // 4, 80 * 2**20)


def contract_reference(x, gain=2):
    """Pure-JAX transcription of the PyTorch forward (for verification)."""
    N, C, H, W = x.shape
    s = int(gain)
    xr = x.reshape(N, C, H // s, s, W // s, s)
    xp = jnp.transpose(xr, (0, 3, 5, 1, 2, 4))
    return xp.reshape(N, C * s * s, H // s, W // s)


# ---------------------------------------------------------------------------
# Direct NCHW -> NCHW kernel (default path, 1 read + 1 write of HBM).
# ---------------------------------------------------------------------------
def _contract_direct_nchw(x, s, *, block_c=None, block_ho=None):
    """Space-to-depth consuming and producing NCHW in one Pallas pass.

    The NCHW output is produced through its free row-major view
    (N, s, s, C, Ho, Wo) == (N, s*s*C, Ho, Wo).  `block_ho`, if given, must be
    a multiple of 8 or >= Ho (BlockSpec (8,128) second-minor rule).
    """
    N, C, H, W = x.shape
    Ho, Wo = H // s, W // s
    isz = jnp.dtype(x.dtype).itemsize
    cap, budget = _vmem_caps()
    pair_target = min(budget // 3, 24 * 2**20)

    def blk_bytes(ct, th):
        hs = th * s
        in_b = ct * _round_up(hs, 8) * _round_up(W, 128) * isz
        out_b = s * s * ct * _round_up(th, 8) * _round_up(Wo, 128) * isz
        scr_b = ct * _round_up(W, 8) * _round_up(th, 128) * isz
        return in_b, out_b, scr_b

    # Ho tile: multiple of 8 (or full Ho) so both the input (th*s) and output
    # (th) blocks satisfy the (8, 128) second-minor tiling rule.
    if block_ho is not None:
        th = max(1, min(block_ho, Ho))
    elif Ho <= 128:
        th = Ho
    else:
        th = 128
        while th > 8 and sum(blk_bytes(1, th)) > pair_target:
            th -= 8

    # C tile: keep the per-step footprint near target; C is a plain loop dim
    # (no tiling constraint).
    if block_c is not None:
        ct = max(1, min(block_c, C))
    else:
        per_c = sum(blk_bytes(1, th))
        ct = max(1, min(C, pair_target // max(1, per_c)))
        if (N == 1 and block_ho is None
                and pl.cdiv(C, ct) * pl.cdiv(Ho, th) < 2):
            # v7x megacore: guarantee >= 2 parallel grid steps.
            if C >= 2:
                ct = -(-C // 2)
            elif Ho >= 16:
                th = _round_up(-(-Ho // 2), 8)

    Hs = th * s
    in_b, out_b, scr_b = blk_bytes(ct, th)
    footprint = 2 * (in_b + out_b) + scr_b          # double-buffered in/out
    vmem_limit = int(min(max(footprint * 1.25 + (1 << 20), 8 * 2**20),
                         cap - 2 * 2**20))

    def kernel(x_ref, o_ref, tr_ref):
        # x_ref : (ct, th*s, W)        NCHW rows, W on lanes
        # o_ref : (s, s, ct, th, Wo)   free view of NCHW output channels
        # tr_ref: (ct, W, th)          scratch holding the transposed sh-slab
        #
        # Per sh: pull rows ho*s+sh (sublane-strided read), transpose so W
        # sits on sublanes, pull columns wo*s+sw (sublane-strided read) and
        # transpose back so the stored rows are lane-dense Wo runs.  The XLU
        # work overlaps with the block DMAs of a purely bandwidth-bound op.
        for sh in range(s):
            rows = x_ref[:, pl.ds(sh, th, stride=s), :]            # (ct, th, W)
            tr_ref[...] = jnp.swapaxes(rows, -1, -2)               # (ct, W, th)
            for sw in range(s):
                cols = tr_ref[:, pl.ds(sw, Wo, stride=s), :]       # (ct, Wo, th)
                o_ref[sh, sw, :, :, :] = jnp.swapaxes(cols, -1, -2)

    out6 = pl.pallas_call(
        kernel,
        out_shape=jax.ShapeDtypeStruct((N, s, s, C, Ho, Wo), x.dtype),
        grid=(N, pl.cdiv(C, ct), pl.cdiv(Ho, th)),
        in_specs=[pl.BlockSpec((None, ct, Hs, W),
                               lambda n, cb, hb: (n, cb, hb, 0))],
        out_specs=pl.BlockSpec((None, s, s, ct, th, Wo),
                               lambda n, cb, hb: (n, 0, 0, cb, hb, 0)),
        scratch_shapes=[pltpu.VMEM((ct, W, th), x.dtype)],
        compiler_params=pltpu.CompilerParams(
            dimension_semantics=("parallel", "parallel", "parallel"),
            vmem_limit_bytes=vmem_limit,
        ),
    )(x)
    # Row-major merge (s, s, C) -> s*s*C: free reshape, no extra HBM pass.
    return out6.reshape(N, s * s * C, Ho, Wo)


# ---------------------------------------------------------------------------
# Channels-last slab-copy kernel (channels_last_out path + fallback).
# ---------------------------------------------------------------------------
def _contract_channels_last(x, s, *, block_ho=None):
    """Space-to-depth producing channels-last output (N, Ho, Wo, s*s*C).

    The last-axis channel order is sh*s*C + sw*C + c, identical to the NCHW
    channel order, so channels-last consumers use it directly and the NCHW
    fallback only needs one trailing transpose.
    """
    N, C, H, W = x.shape
    Ho, Wo = H // s, W // s
    sC, ssC = s * C, s * s * C
    isz = jnp.dtype(x.dtype).itemsize
    cap, budget = _vmem_caps()

    # NCHW -> (N, Ho, s, Wo, s*C) channels-last view.  allow_input_fusion lets
    # XLA fuse this transpose into the kernel's input DMA; verify in the HLO /
    # xprof trace that it actually fuses (if not, it is one extra HBM pass --
    # which is exactly why the direct NCHW kernel is the default path).
    xv = jnp.transpose(x, (0, 2, 3, 1)).reshape(N, Ho, s, Wo, sC)

    in_row = s * _round_up(Wo, 8) * _round_up(sC, 128) * isz
    out_row = _round_up(Wo, 8) * _round_up(ssC, 128) * isz
    if block_ho is not None:
        th = max(1, min(block_ho, Ho))
    else:
        pair_target = min(budget // 3, 24 * 2**20)
        th = max(1, min(Ho, pair_target // max(1, in_row + out_row)))
        if N == 1 and Ho >= 2:
            th = min(th, -(-Ho // 2))      # >= 2 parallel steps for megacore
    footprint = 2 * th * (in_row + out_row)
    vmem_limit = int(min(max(footprint * 1.25 + (1 << 20), 8 * 2**20),
                         cap - 2 * 2**20))

    def kernel(x_ref, o_ref):
        # x_ref: (th, s, Wo, s*C);  o_ref: (th, Wo, s*s*C).  Each sh-slab is a
        # full-tile copy into the lane window [sh*s*C, (sh+1)*s*C); for real
        # channel counts s*C % 128 == 0, so stores are unmasked/vreg-aligned.
        for sh in range(s):
            o_ref[:, :, sh * sC:(sh + 1) * sC] = x_ref[:, sh, :, :]

    return pl.pallas_call(
        kernel,
        out_shape=jax.ShapeDtypeStruct((N, Ho, Wo, ssC), x.dtype),
        grid=(N, pl.cdiv(Ho, th)),
        in_specs=[pl.BlockSpec((None, th, s, Wo, sC),
                               lambda n, i: (n, i, 0, 0, 0))],
        out_specs=pl.BlockSpec((None, th, Wo, ssC),
                               lambda n, i: (n, i, 0, 0)),
        compiler_params=pltpu.CompilerParams(
            dimension_semantics=("parallel", "parallel"),
            vmem_limit_bytes=vmem_limit,
            allow_input_fusion=[True],
        ),
    )(xv)


# ---------------------------------------------------------------------------
# Feature probe + public entry point.
# ---------------------------------------------------------------------------
_DIRECT_NCHW_OK = {}


def _direct_nchw_supported(dtype, gain):
    """Feature-detect the direct NCHW kernel once per (dtype, gain).

    Runs a tiny input through the direct kernel and checks exact equality
    against the pure-JAX reference; any lowering error or mismatch selects the
    channels-last fallback.  The result is cached, so jitted callers see a
    concrete Python bool at trace time.
    """
    key = (jnp.dtype(dtype).name, int(gain))
    if key not in _DIRECT_NCHW_OK:
        ok = False
        try:
            s = int(gain)
            n = 2 * 2 * (8 * s) * (8 * s)
            xp = (jnp.arange(n) % 13).astype(dtype).reshape(2, 2, 8 * s, 8 * s)
            got = _contract_direct_nchw(xp, s)
            ok = bool(jnp.array_equal(got, contract_reference(xp, s)))
        except Exception:
            ok = False
        _DIRECT_NCHW_OK[key] = ok
    return _DIRECT_NCHW_OK[key]


def contract(x, gain=2, *, channels_last_out=False):
    """Space-to-depth matching the PyTorch `Contract` module.

    Default returns NCHW (N, C*gain^2, H//gain, W//gain), exactly like the
    PyTorch forward.  `channels_last_out=True` returns (N, Ho, Wo, C*gain^2)
    with the same channel order, letting channels-last consumers skip the
    layout round trip entirely.
    """
    N, C, H, W = x.shape
    s = int(gain)
    assert H % s == 0 and W % s == 0, "H and W must be divisible by gain"
    if s == 1:
        return x
    if channels_last_out:
        return _contract_channels_last(x, s)
    if _direct_nchw_supported(x.dtype, s):
        return _contract_direct_nchw(x, s)
    # Fallback: channels-last kernel + one XLA transpose back to NCHW.
    out_cl = _contract_channels_last(x, s)
    return jnp.transpose(out_cl, (0, 3, 1, 2))


if __name__ == "__main__":
    key = jax.random.PRNGKey(0)
    k0, k1, k2 = jax.random.split(key, 3)

    # 1) Toy NCHW shape, eager (also warms the f32/gain-2 feature probe).
    x = jax.random.normal(k0, (2, 4, 16, 16), dtype=jnp.float32)
    ref = contract_reference(x, 2)
    out = jax.block_until_ready(contract(x, 2))
    assert out.shape == (2, 16, 8, 8) and out.dtype == x.dtype
    assert jnp.array_equal(out, ref), "mismatch (toy shape)"

    # 2) Jitted wrapper, lane-aligned channel count (s*C = 128).
    contract_jit = jax.jit(functools.partial(contract, gain=2))
    x2 = jax.random.normal(k1, (1, 64, 16, 16), dtype=jnp.float32)
    out2 = jax.block_until_ready(contract_jit(x2))
    assert jnp.array_equal(out2, contract_reference(x2, 2)), "mismatch (aligned C)"

    # 3) bf16 (common inference dtype).
    x3 = jax.random.normal(k2, (1, 64, 16, 16)).astype(jnp.bfloat16)
    out3 = jax.block_until_ready(contract(x3, 2))
    assert jnp.array_equal(out3, contract_reference(x3, 2)), "mismatch (bf16)"

    # 4) Channels-last output option (no trailing transpose).
    out_cl = jax.block_until_ready(contract(x, 2, channels_last_out=True))
    assert jnp.array_equal(out_cl, jnp.transpose(ref, (0, 2, 3, 1))), \
        "mismatch (channels-last out)"

    # 5) Non-default gain.
    x4 = jax.random.normal(k0, (1, 3, 8, 8), dtype=jnp.float32)
    out4 = jax.block_until_ready(contract(x4, 4))
    assert jnp.array_equal(out4, contract_reference(x4, 4)), "mismatch (gain=4)"

    # 6) Ragged (cdiv) tiles, forced small blocks, on both kernels.
    x5 = jax.random.normal(k1, (1, 5, 40, 32), dtype=jnp.float32)
    ref5 = contract_reference(x5, 2)
    out5c = jax.block_until_ready(_contract_channels_last(x5, 2, block_ho=3))
    assert jnp.array_equal(out5c, jnp.transpose(ref5, (0, 2, 3, 1))), \
        "mismatch (ragged, channels-last kernel)"
    if _direct_nchw_supported(x5.dtype, 2):
        out5d = jax.block_until_ready(
            _contract_direct_nchw(x5, 2, block_c=2, block_ho=8))
        assert jnp.array_equal(out5d, ref5), "mismatch (ragged, direct kernel)"

    print("KERNEL_OK")
</pallas_src>

<mosaic_0001>
module attributes {stable_mosaic.version = 11 : i64} {
  func.func @kernel(%arg0: i32, %arg1: i32, %arg2: i32, %arg3: memref<1x2x16x16xf32, #tpu.memory_space<vmem>>, %arg4: memref<1x2x2x2x8x8xf32, #tpu.memory_space<vmem>>, %arg5: memref<2x16x8xf32, #tpu.memory_space<vmem>>) attributes {dimension_semantics = [#tpu.dimension_semantics<parallel>, #tpu.dimension_semantics<parallel>, #tpu.dimension_semantics<parallel>], iteration_bounds = array<i64: 2, 1, 1>, scalar_prefetch = 0 : i64, scratch_operands = 1 : i64, tpu.core_type = #tpu.core_type<tc>, window_params = [{transform_indices = @transform_0, window_bounds = array<i64: 1, 2, 16, 16>}, {transform_indices = @transform_1, window_bounds = array<i64: 1, 2, 2, 2, 8, 8>}]} {
    %c0 = arith.constant 0 : index
    %c0_0 = arith.constant 0 : index
    %c0_1 = arith.constant 0 : index
    %c0_2 = arith.constant 0 : index
    %0 = tpu.strided_load %arg3[%c0, %c0_0, %c0_1, %c0_2] {strides = array<i32: 1, 1, 2, 1>} : memref<1x2x16x16xf32, #tpu.memory_space<vmem>>, vector<1x2x8x16xf32>
    %1 = vector.shape_cast %0 : vector<1x2x8x16xf32> to vector<2x8x16xf32>
    %2 = tpu.transpose %1, [0, 2, 1] : vector<2x8x16xf32> -> vector<2x16x8xf32>
    %c0_3 = arith.constant 0 : index
    %c0_4 = arith.constant 0 : index
    %c0_5 = arith.constant 0 : index
    %3 = vector.load %arg5[%c0_3, %c0_4, %c0_5] : memref<2x16x8xf32, #tpu.memory_space<vmem>>, vector<2x16x8xf32>
    tpu.vector_store %arg5[%c0_3, %c0_4, %c0_5], %2 {strides = array<i32>} : memref<2x16x8xf32, #tpu.memory_space<vmem>>, vector<2x16x8xf32>,
    %c0_6 = arith.constant 0 : index
    %c0_7 = arith.constant 0 : index
    %c0_8 = arith.constant 0 : index
    %4 = tpu.strided_load %arg5[%c0_6, %c0_7, %c0_8] {strides = array<i32: 1, 2, 1>} : memref<2x16x8xf32, #tpu.memory_space<vmem>>, vector<2x8x8xf32>
    %5 = tpu.transpose %4, [0, 2, 1] : vector<2x8x8xf32> -> vector<2x8x8xf32>
    %c0_9 = arith.constant 0 : index
    %c0_10 = arith.constant 0 : index
    %c0_11 = arith.constant 0 : index
    %c0_12 = arith.constant 0 : index
    %c0_13 = arith.constant 0 : index
    %c0_14 = arith.constant 0 : index
    %6 = vector.load %arg4[%c0_9, %c0_10, %c0_11, %c0_12, %c0_13, %c0_14] : memref<1x2x2x2x8x8xf32, #tpu.memory_space<vmem>>, vector<1x1x1x2x8x8xf32>
    %7 = vector.shape_cast %6 : vector<1x1x1x2x8x8xf32> to vector<2x8x8xf32>
    %8 = vector.shape_cast %5 : vector<2x8x8xf32> to vector<1x1x1x2x8x8xf32>
    tpu.vector_store %arg4[%c0_9, %c0_10, %c0_11, %c0_12, %c0_13, %c0_14], %8 {strides = array<i32>} : memref<1x2x2x2x8x8xf32, #tpu.memory_space<vmem>>, vector<1x1x1x2x8x8xf32>,
    %c0_15 = arith.constant 0 : index
    %c1 = arith.constant 1 : index
    %c0_16 = arith.constant 0 : index
    %9 = tpu.strided_load %arg5[%c0_15, %c1, %c0_16] {strides = array<i32: 1, 2, 1>} : memref<2x16x8xf32, #tpu.memory_space<vmem>>, vector<2x8x8xf32>
    %10 = tpu.transpose %9, [0, 2, 1] : vector<2x8x8xf32> -> vector<2x8x8xf32>
    %c0_17 = arith.constant 0 : index
    %c0_18 = arith.constant 0 : index
    %c1_19 = arith.constant 1 : index
    %c0_20 = arith.constant 0 : index
    %c0_21 = arith.constant 0 : index
    %c0_22 = arith.constant 0 : index
    %11 = vector.load %arg4[%c0_17, %c0_18, %c1_19, %c0_20, %c0_21, %c0_22] : memref<1x2x2x2x8x8xf32, #tpu.memory_space<vmem>>, vector<1x1x1x2x8x8xf32>
    %12 = vector.shape_cast %11 : vector<1x1x1x2x8x8xf32> to vector<2x8x8xf32>
    %13 = vector.shape_cast %10 : vector<2x8x8xf32> to vector<1x1x1x2x8x8xf32>
    tpu.vector_store %arg4[%c0_17, %c0_18, %c1_19, %c0_20, %c0_21, %c0_22], %13 {strides = array<i32>} : memref<1x2x2x2x8x8xf32, #tpu.memory_space<vmem>>, vector<1x1x1x2x8x8xf32>,
    %c0_23 = arith.constant 0 : index
    %c0_24 = arith.constant 0 : index
    %c1_25 = arith.constant 1 : index
    %c0_26 = arith.constant 0 : index
    %14 = tpu.strided_load %arg3[%c0_23, %c0_24, %c1_25, %c0_26] {strides = array<i32: 1, 1, 2, 1>} : memref<1x2x16x16xf32, #tpu.memory_space<vmem>>, vector<1x2x8x16xf32>
    %15 = vector.shape_cast %14 : vector<1x2x8x16xf32> to vector<2x8x16xf32>
    %16 = tpu.transpose %15, [0, 2, 1] : vector<2x8x16xf32> -> vector<2x16x8xf32>
    %c0_27 = arith.constant 0 : index
    %c0_28 = arith.constant 0 : index
    %c0_29 = arith.constant 0 : index
    %17 = vector.load %arg5[%c0_27, %c0_28, %c0_29] : memref<2x16x8xf32, #tpu.memory_space<vmem>>, vector<2x16x8xf32>
    tpu.vector_store %arg5[%c0_27, %c0_28, %c0_29], %16 {strides = array<i32>} : memref<2x16x8xf32, #tpu.memory_space<vmem>>, vector<2x16x8xf32>,
    %c0_30 = arith.constant 0 : index
    %c0_31 = arith.constant 0 : index
    %c0_32 = arith.constant 0 : index
    %18 = tpu.strided_load %arg5[%c0_30, %c0_31, %c0_32] {strides = array<i32: 1, 2, 1>} : memref<2x16x8xf32, #tpu.memory_space<vmem>>, vector<2x8x8xf32>
    %19 = tpu.transpose %18, [0, 2, 1] : vector<2x8x8xf32> -> vector<2x8x8xf32>
    %c0_33 = arith.constant 0 : index
    %c1_34 = arith.constant 1 : index
    %c0_35 = arith.constant 0 : index
    %c0_36 = arith.constant 0 : index
    %c0_37 = arith.constant 0 : index
    %c0_38 = arith.constant 0 : index
    %20 = vector.load %arg4[%c0_33, %c1_34, %c0_35, %c0_36, %c0_37, %c0_38] : memref<1x2x2x2x8x8xf32, #tpu.memory_space<vmem>>, vector<1x1x1x2x8x8xf32>
    %21 = vector.shape_cast %20 : vector<1x1x1x2x8x8xf32> to vector<2x8x8xf32>
    %22 = vector.shape_cast %19 : vector<2x8x8xf32> to vector<1x1x1x2x8x8xf32>
    tpu.vector_store %arg4[%c0_33, %c1_34, %c0_35, %c0_36, %c0_37, %c0_38], %22 {strides = array<i32>} : memref<1x2x2x2x8x8xf32, #tpu.memory_space<vmem>>, vector<1x1x1x2x8x8xf32>,
    %c0_39 = arith.constant 0 : index
    %c1_40 = arith.constant 1 : index
    %c0_41 = arith.constant 0 : index
    %23 = tpu.strided_load %arg5[%c0_39, %c1_40, %c0_41] {strides = array<i32: 1, 2, 1>} : memref<2x16x8xf32, #tpu.memory_space<vmem>>, vector<2x8x8xf32>
    %24 = tpu.transpose %23, [0, 2, 1] : vector<2x8x8xf32> -> vector<2x8x8xf32>
    %c0_42 = arith.constant 0 : index
    %c1_43 = arith.constant 1 : index
    %c1_44 = arith.constant 1 : index
    %c0_45 = arith.constant 0 : index
    %c0_46 = arith.constant 0 : index
    %c0_47 = arith.constant 0 : index
    %25 = vector.load %arg4[%c0_42, %c1_43, %c1_44, %c0_45, %c0_46, %c0_47] : memref<1x2x2x2x8x8xf32, #tpu.memory_space<vmem>>, vector<1x1x1x2x8x8xf32>
    %26 = vector.shape_cast %25 : vector<1x1x1x2x8x8xf32> to vector<2x8x8xf32>
    %27 = vector.shape_cast %24 : vector<2x8x8xf32> to vector<1x1x1x2x8x8xf32>
    tpu.vector_store %arg4[%c0_42, %c1_43, %c1_44, %c0_45, %c0_46, %c0_47], %27 {strides = array<i32>} : memref<1x2x2x2x8x8xf32, #tpu.memory_space<vmem>>, vector<1x1x1x2x8x8xf32>,
    return
  }
  func.func @transform_0(%arg0: i32, %arg1: i32, %arg2: i32) -> (i32, i32, i32, i32) {
    %c0_i32 = arith.constant 0 : i32
    %c0_i32_0 = arith.constant 0 : i32
    return %arg0, %arg1, %arg2, %c0_i32 : i32, i32, i32, i32
  }
  func.func @transform_1(%arg0: i32, %arg1: i32, %arg2: i32) -> (i32, i32, i32, i32, i32, i32) {
    %c0_i32 = arith.constant 0 : i32
    %c0_i32_0 = arith.constant 0 : i32
    %c0_i32_1 = arith.constant 0 : i32
    %c0_i32_2 = arith.constant 0 : i32
    return %arg0, %c0_i32, %c0_i32_0, %arg1, %arg2, %c0_i32_1 : i32, i32, i32, i32, i32, i32
  }
}

module attributes {stable_mosaic.version = 11 : i64} {
  func.func @kernel(%arg0: i32, %arg1: i32, %arg2: memref<1x8x2x8x8xf32, #tpu.memory_space<vmem>>, %arg3: memref<1x8x8x16xf32, #tpu.memory_space<vmem>>) attributes {dimension_semantics = [#tpu.dimension_semantics<parallel>, #tpu.dimension_semantics<parallel>], iteration_bounds = array<i64: 2, 1>, scalar_prefetch = 0 : i64, scratch_operands = 0 : i64, tpu.core_type = #tpu.core_type<tc>, window_params = [{transform_indices = @transform_0, window_bounds = array<i64: 1, 8, 2, 8, 8>}, {transform_indices = @transform_1, window_bounds = array<i64: 1, 8, 8, 16>}]} {
    %c0 = arith.constant 0 : index
    %c0_0 = arith.constant 0 : index
    %c0_1 = arith.constant 0 : index
    %c0_2 = arith.constant 0 : index
    %c0_3 = arith.constant 0 : index
    %0 = vector.load %arg2[%c0, %c0_0, %c0_1, %c0_2, %c0_3] : memref<1x8x2x8x8xf32, #tpu.memory_space<vmem>>, vector<1x8x1x8x8xf32>
    %1 = vector.shape_cast %0 : vector<1x8x1x8x8xf32> to vector<8x8x8xf32>
    %c0_4 = arith.constant 0 : index
    %c0_5 = arith.constant 0 : index
    %c0_6 = arith.constant 0 : index
    %c0_7 = arith.constant 0 : index
    %2 = vector.load %arg3[%c0_4, %c0_5, %c0_6, %c0_7] : memref<1x8x8x16xf32, #tpu.memory_space<vmem>>, vector<1x8x8x8xf32>
    %3 = vector.shape_cast %2 : vector<1x8x8x8xf32> to vector<8x8x8xf32>
    %4 = vector.shape_cast %1 : vector<8x8x8xf32> to vector<1x8x8x8xf32>
    tpu.vector_store %arg3[%c0_4, %c0_5, %c0_6, %c0_7], %4 {strides = array<i32>} : memref<1x8x8x16xf32, #tpu.memory_space<vmem>>, vector<1x8x8x8xf32>,
    %c0_8 = arith.constant 0 : index
    %c0_9 = arith.constant 0 : index
    %c1 = arith.constant 1 : index
    %c0_10 = arith.constant 0 : index
    %c0_11 = arith.constant 0 : index
    %5 = vector.load %arg2[%c0_8, %c0_9, %c1, %c0_10, %c0_11] : memref<1x8x2x8x8xf32, #tpu.memory_space<vmem>>, vector<1x8x1x8x8xf32>
    %6 = vector.shape_cast %5 : vector<1x8x1x8x8xf32> to vector<8x8x8xf32>
    %c0_12 = arith.constant 0 : index
    %c0_13 = arith.constant 0 : index
    %c0_14 = arith.constant 0 : index
    %c8 = arith.constant 8 : index
    %7 = vector.load %arg3[%c0_12, %c0_13, %c0_14, %c8] : memref<1x8x8x16xf32, #tpu.memory_space<vmem>>, vector<1x8x8x8xf32>
    %8 = vector.shape_cast %7 : vector<1x8x8x8xf32> to vector<8x8x8xf32>
    %9 = vector.shape_cast %6 : vector<8x8x8xf32> to vector<1x8x8x8xf32>
    tpu.vector_store %arg3[%c0_12, %c0_13, %c0_14, %c8], %9 {strides = array<i32>} : memref<1x8x8x16xf32, #tpu.memory_space<vmem>>, vector<1x8x8x8xf32>,
    return
  }
  func.func @transform_0(%arg0: i32, %arg1: i32) -> (i32, i32, i32, i32, i32) {
    %c0_i32 = arith.constant 0 : i32
    %c0_i32_0 = arith.constant 0 : i32
    %c0_i32_1 = arith.constant 0 : i32
    %c0_i32_2 = arith.constant 0 : i32
    return %arg0, %arg1, %c0_i32, %c0_i32_0, %c0_i32_1 : i32, i32, i32, i32, i32
  }
  func.func @transform_1(%arg0: i32, %arg1: i32) -> (i32, i32, i32, i32) {
    %c0_i32 = arith.constant 0 : i32
    %c0_i32_0 = arith.constant 0 : i32
    %c0_i32_1 = arith.constant 0 : i32
    return %arg0, %arg1, %c0_i32, %c0_i32_0 : i32, i32, i32, i32
  }
}

</mosaic_0001>

<bundles_post_ra>
// kernel: tpu_custom_call.1
= control target key start
LH: loop header
LB: loop body
LE: loop exit
PB: predicated region body
PF: predicated region fallthrough
CT: control target
= control target key end

     0   :  { %6 = vsyncpa [#allocation4], 0  ;;  %s1117_s0 = inlined_call_operand.hbm [shape: f32[2,2,16,16], index: 0, kind: input, shape index: {}]   ;;  %s1118_s1 = inlined_call_operand.hbm [shape: f32[2,2,2,2,8,8], index: 1, kind: output, shape index: {}]  }
   0x1   :  { %8 = vsyncpa [#allocation4 + $0x1], 0 }
   0x2   :  { %9 = vsyncpa [#allocation5], 0 }
   0x3   :  { %11 = vsyncpa [#allocation5 + $0x1], 0  ;;  %s925_s6 = smov 0   ;;  %s927_s7 = smov 0  }
   0x4   :  { %s929_s8 = smov 0   ;;  %s931_s9 = smov 0  }
   0x5   :  { %s933_s10 = smov 0   ;;  %s935_s11 = smov 0  }
   0x6 LB: > { %s702_s12 = sadd.s32 4294967295, %s907_s11   ;;  %s703_s13 = sadd.s32 4294967294, %s907_s11   ;;  %s907_s11 = sphi %s935_s11, %s17_s11   ;;  %s903_s10 = sphi %s933_s10, %s1133_s10   ;;  %s899_s9 = sphi %s931_s9, %s1132_s9   ;;  %s895_s8 = sphi %s929_s8, %s1131_s8   ;;  %s891_s7 = sphi %s927_s7, %s1130_s7   ;;  %s887_s6 = sphi %s925_s6, %s1129_s6  }
   0x7   : > { %s36_s14 = sadd.s32 1, %s903_s10  ;;  %s47_s15 = sadd.s32 1, %s895_s8 }
   0x8   : > { %p38_p0 = scmp.ge.s32.totalorder %s36_s14, 2  ;;  %p54_p1 = scmp.ne.s32.totalorder %s895_s8, %s891_s7 }
   0x9   : > { %p55_p2 = scmp.eq.s32.totalorder %s907_s11, 0  ;;  %p60_p3 = scmp.ne.s32.totalorder %s891_s7, %s887_s6 }
   0xa   : > { %s1135_s14 = smov (%p38_p0, %s36_s14), 0  ;;  %p61_p5 = scmp.eq.s32.totalorder %s702_s12, 0 }
   0xb   : > { %p966_p4 = por %p55_p2, %p54_p1  ;;  %s40_s17 = ssub.s32 %s903_s10, %s1135_s14 }
   0xc   : > { %p88_p6 = scmp.eq.s32.totalorder %s702_s12, 1  ;;  %p45_p7 = scmp.eq.s32.totalorder %s40_s17, 0 }
   0xd   : > { %p972_p8 = por %p61_p5, %p60_p3  ;;  %p94_p10 = scmp.eq.s32.totalorder %s703_s13, 1 }
   0xe   : > { %p976_p9 = por %p88_p6, %p54_p1  ;;  %p740_p13 = scmp.lt.s32.totalorder %s907_s11, 2 }
   0xf   : > { %s981_s20 = scalar_select %p45_p7, %s895_s8, %s47_s15  }
  0x10   : > { %s1122_s19 = scalar_select %p976_p9, 1, 0 }
  0x11   : > { %p983_p11 = por %p94_p10, %p60_p3  ;;  %s114_s22 = sand.u32 1, %s895_s8  }
  0x12   : > { %s706_s23 = sshll.u32 %s114_s22, 5  ;;  %s726_s24 = sshll.u32 %s903_s10, 9 }
  0x13   : > { %s1123_s21 = scalar_select %p983_p11, 1, 0 }
  0x14   : > { %s994_s27 = scalar_lea.hbm %s1117_s0, %s726_s24  ;;  %s118_s28 = scalar_lea.vmem [#allocation3], %s706_s23 }
  0x15   : > { %s130_s29 = sshll.u32 %s118_s28, 4  ;;  %p1000_p0 = pnand %p740_p13, %p966_p4  ;;  %s996_s29 = int_to_ptr.vmem [resolvable:$true] %s130_s29 }
  0x16   : > { %s1005_s2 = scalar_lea.sflag [#allocation4], %s114_s22  ;;  %s795_s3 = scalar_lea.hbm %s994_s27, 512 }
  0x17   : > { %p796_p2 = scmp.ne.s32.totalorder %s994_s27, %s795_s3  ;;  %p797_p3 = pneg %p1000_p0 }
  0x18   : > { %s800_s12 = scalar_lea.hbm %s1117_s0, 1024  ;;  %p801_p4 = scmp.lt.u32.totalorder %s994_s27, %s1117_s0 }
  0x19   : > { %p798_p5 = pnand %p797_p3, %p796_p2  ;;  %p802_p7 = scmp.lt.u32.totalorder %s800_s12, %s795_s3 }
  0x1a   : > { %p804_p13 = scmp.lt.u32.totalorder %s795_s3, %s994_s27 }
  0x1b   : > { %p799_p6 = pneg %p798_p5  ;;  %p803_p10 = por %p802_p7, %p801_p4 }
  0x1d   : > { %p805_p12 = por %p804_p13, %p803_p10 }
  0x1f   : > { %p806_p1 = pnand %p805_p12, %p799_p6 }
  0x21   : > { %809 = shalt.err (!%p806_p1)
}
  0x22   : > { %s810_s16 = scalar_lea.vmem %s996_s29, 512  ;;  %s909_s17 = smov [#allocation3]  }
  0x23   : > { %p811_p2 = scmp.ne.s32.totalorder %s996_s29, %s810_s16  ;;  %s815_s22 = sshll.u32 %s909_s17, 4  ;;  %s816_s22 = int_to_ptr.vmem [resolvable:$false] %s815_s22 }
  0x24   : > { %s817_s23 = scalar_lea.vmem %s816_s22, 1024  ;;  %p818_p9 = scmp.lt.s32.totalorder %s996_s29, %s816_s22 }
  0x25   : > { %p813_p5 = pnand %p811_p2, %p797_p3  ;;  %p819_p4 = scmp.lt.s32.totalorder %s817_s23, %s810_s16 }
  0x27   : > { %p814_p11 = pneg %p813_p5  ;;  %p820_p7 = por %p819_p4, %p818_p9 }
  0x29   : > { %p821_p10 = pnand %p820_p7, %p814_p11 }
  0x2b   : > { %824 = shalt.err (!%p821_p10)
}
  0x2c   : > { %s910_s24 = smov 128   ;;  %s911_s25 = smov 8  }
  0x2d   : > { %735 = dma.hbm_to_vmem [thread:$0]  (!%p1000_p0), %s994_s27, 512, %s996_s29, %s1005_s2, %s910_s24, %s910_s24, %s911_s25  }
  0x2e   : > { %p138_p12 = scmp.lt.s32.totalorder %s907_s11, 3  ;;  %p1125_p1 = scmp.ge.s32.totalorder %s907_s11, 1 }
  0x30   : > { %p139_p3 = pnand %p1125_p1, %p138_p12 }
  0x31   : > { %s1037_s26 = sand.u32 (!%p139_p3), 1, %s891_s7  }
  0x32   : > { %142 = sbr.rel (%p139_p3) target bundleno = 364 (0x16c), region = 24  ;;  %s710_s28 = sshll.u32 (!%p139_p3), %s1037_s26, 5 }
  0x33   : > { %s145_s3 = scalar_lea.sflag (!%p139_p3), [#allocation4], %s1037_s26  ;;  %s148_s4 = scalar_lea.vmem (!%p139_p3), [#allocation3], %s710_s28 }
  0x39   : > { %878 = dma.done.wait (%p972_p8), %s145_s3, 512  }
  0x3a   : > { %880 = vsyncadd (%p972_p8), %s145_s3, 4294966784  ;;  %v170_v0 = vld [vmem:[%s148_s4] ss:$2 sm:$0xff]  ;;  %v715_v1 = vld [vmem:[%s148_s4 + $0x1] ss:$2 sm:$0xff]  ;;  %vm237_vm0 = vcmask 64512  }
  0x3b   : > { %173 = vxpose.xlu0.b32.start.end [1/1] (short) (narrow) %v170_v0, 16  ;;  %386 = vxpose.xlu1.b32.start.end [1/1] (short) (narrow) %v715_v1, 16  ;;  %v712_v2 = vld [vmem:[%s148_s4 + $0x10] ss:$2 sm:$0xff]  ;;  %v716_v3 = vld [vmem:[%s148_s4 + $0x11] ss:$2 sm:$0xff] }
  0x3c   : > { %s711_s18 = sshll.u32 %s1037_s26, 6  ;;  %s727_s30 = sshll.u32 %s899_s9, 10 }
  0x3d   : > { %s166_s27 = scalar_lea.vmem [#allocation6], %s711_s18  ;;  %s1067_s12 = scalar_lea.hbm %s1118_s1, %s727_s30 }
  0x3e   : > { %s609_s29 = sshll.u32 %s166_s27, 4  ;;  %s593_s13 = scalar_lea.sflag [#allocation5], %s1037_s26  ;;  %s1061_s29 = int_to_ptr.vmem [resolvable:$true] %s609_s29 }
  0x3f   : > { %s825_s15 = scalar_lea.vmem %s1061_s29, 1024  ;;  %p1126_p9 = scmp.ne.s32.totalorder %s1122_s19, 0 }
  0x40   : > { %205 = vxpose.xlu0.b32.start.end [1/1] (short) (narrow) %v712_v2, 16  ;;  %418 = vxpose.xlu1.b32.start.end [1/1] (short) (narrow) %v716_v3, 16  ;;  %p826_p8 = scmp.ne.s32.totalorder %s1061_s29, %s825_s15  ;;  %s912_s9 = smov [#allocation6]  }
  0x41   : > { %s829_s16 = sshll.u32 %s912_s9, 4  ;;  %s830_s16 = int_to_ptr.vmem [resolvable:$false] %s829_s16 }
  0x42   : > { %p827_p11 = pnand %p826_p8, %p1126_p9  ;;  %s831_s17 = scalar_lea.vmem %s830_s16, 2048 }
  0x43   : > { %p832_p6 = scmp.lt.s32.totalorder %s1061_s29, %s830_s16  ;;  %p833_p13 = scmp.lt.s32.totalorder %s831_s17, %s825_s15 }
  0x44   : > { %p828_p0 = pneg %p827_p11 }
  0x45   : > { %p834_p2 = por %p833_p13, %p832_p6 }
  0x47   : > { %p835_p5 = pnand %p834_p2, %p828_p0 }
  0xbb   : > { %v189_v4 = vpop.trf.xlu0  ;;  %v402_v5 = vpop.trf.xlu1 }
  0xbc   : > { %238 = vst.msk [vmem:[#allocation2] sm:$0xff] %vm237_vm0, %v189_v4 }
  0xbf   : > { %v190_v6 = vpop.trf.xlu0  ;;  %v403_v7 = vpop.trf.xlu1 }
  0xc0   : > { %239 = vst.msk [vmem:[#allocation2 + $0x8] sm:$0xff] %vm237_vm0, %v190_v6 }
  0xc3   : > { %v221_v8 = vpop.trf.xlu0  ;;  %v434_v12 = vpop.trf.xlu1 }
  0xc4   : > { %240 = vst.msk [vmem:[#allocation2 + $0x10] sm:$0xff] %vm237_vm0, %v221_v8 }
  0xc7   : > { %v222_v9 = vpop.trf.xlu0  ;;  %v242_v10 = vld [vmem:[#allocation2] ss:$2 sm:$0xff]  ;;  %v312_v11 = vld [vmem:[#allocation2 + $0x1] ss:$2 sm:$0xff]  ;;  %v435_v13 = vpop.trf.xlu1 }
  0xc8   : > { %241 = vst.msk [vmem:[#allocation2 + $0x18] sm:$0xff] %vm237_vm0, %v222_v9  ;;  %245 = vxpose.xlu0.b32.start.end [1/1] (short) (narrow) %v242_v10, 8  ;;  %450 = vst.msk [vmem:[#allocation2] sm:$0xff] %vm237_vm0, %v402_v5 }
  0xc9   : > { %451 = vst.msk [vmem:[#allocation2 + $0x8] sm:$0xff] %vm237_vm0, %v403_v7 }
  0xcc   : > { %315 = vxpose.xlu0.b32.start.end [1/1] (short) (narrow) %v312_v11, 8 }
  0xcf   : > { %v244_v15 = vld [vmem:[#allocation2 + $0x10] ss:$2 sm:$0xff]  ;;  %v314_v16 = vld [vmem:[#allocation2 + $0x11] ss:$2 sm:$0xff] }
  0xd0   : > { %v454_v14 = vld [vmem:[#allocation2] ss:$2 sm:$0xff]  ;;  %277 = vxpose.xlu1.b32.start.end [1/1] (short) (narrow) %v244_v15, 8  ;;  %452 = vst.msk [vmem:[#allocation2 + $0x10] sm:$0xff] %vm237_vm0, %v434_v12  ;;  %453 = vst.msk [vmem:[#allocation2 + $0x18] sm:$0xff] %vm237_vm0, %v435_v13 }
  0xd1   : > { %456 = vxpose.xlu0.b32.start.end [1/1] (short) (narrow) %v454_v14, 8  ;;  %v523_v17 = vld [vmem:[#allocation2 + $0x1] ss:$2 sm:$0xff] }
  0xd4   : > { %347 = vxpose.xlu1.b32.start.end [1/1] (short) (narrow) %v314_v16, 8 }
  0xd5   : > { %525 = vxpose.xlu0.b32.start.end [1/1] (short) (narrow) %v523_v17, 8 }
  0xd7   : > { %v455_v18 = vld [vmem:[#allocation2 + $0x10] ss:$2 sm:$0xff]  ;;  %v524_v19 = vld [vmem:[#allocation2 + $0x11] ss:$2 sm:$0xff] }
  0xd8   : > { %488 = vxpose.xlu1.b32.start.end [1/1] (short) (narrow) %v455_v18, 8 }
  0xdc   : > { %557 = vxpose.xlu1.b32.start.end [1/1] (short) (narrow) %v524_v19, 8 }
 0x148   : > { %v261_v20 = vpop.trf.xlu0 }
 0x149   : > { %309 = vst.msk [vmem:[%s166_s27] sm:$0xff] %vm237_vm0, %v261_v20 }
 0x14c   : > { %v331_v21 = vpop.trf.xlu0 }
 0x14d   : > { %713 = vst.msk [vmem:[%s166_s27 + $0x10] sm:$0xff] %vm237_vm0, %v331_v21 }
 0x150   : > { %v293_v22 = vpop.trf.xlu1 }
 0x151   : > { %v472_v23 = vpop.trf.xlu0  ;;  %310 = vst.msk [vmem:[%s166_s27 + $0x8] sm:$0xff] %vm237_vm0, %v293_v22 }
 0x152   : > { %717 = vst.msk [vmem:[%s166_s27 + $0x20] sm:$0xff] %vm237_vm0, %v472_v23 }
 0x154   : > { %v363_v24 = vpop.trf.xlu1 }
 0x155   : > { %v541_v25 = vpop.trf.xlu0  ;;  %714 = vst.msk [vmem:[%s166_s27 + $0x18] sm:$0xff] %vm237_vm0, %v363_v24 }
 0x156   : > { %719 = vst.msk [vmem:[%s166_s27 + $0x30] sm:$0xff] %vm237_vm0, %v541_v25 }
 0x158   : > { %v504_v26 = vpop.trf.xlu1 }
 0x159   : > { %718 = vst.msk [vmem:[%s166_s27 + $0x28] sm:$0xff] %vm237_vm0, %v504_v26 }
 0x15c   : > { %v573_v27 = vpop.trf.xlu1 }
 0x15d   : > { %720 = vst.msk [vmem:[%s166_s27 + $0x38] sm:$0xff] %vm237_vm0, %v573_v27 }
 0x15e   : > { %838 = shalt.err (!%p835_p5)
}
 0x15f   : > { %s839_s22 = scalar_lea.hbm %s1067_s12, 1024  ;;  %s843_s25 = scalar_lea.hbm %s1118_s1, 2048 }
 0x160   : > { %p840_p4 = scmp.ne.s32.totalorder %s1067_s12, %s839_s22  ;;  %p844_p12 = scmp.lt.u32.totalorder %s1067_s12, %s1118_s1 }
 0x161   : > { %p845_p1 = scmp.lt.u32.totalorder %s843_s25, %s839_s22  ;;  %p847_p8 = scmp.lt.u32.totalorder %s839_s22, %s1067_s12 }
 0x162   : > { %p841_p7 = pnand %p840_p4, %p1126_p9 }
 0x163   : > { %p846_p3 = por %p845_p1, %p844_p12 }
 0x164   : > { %p842_p10 = pneg %p841_p7 }
 0x165   : > { %p848_p11 = por %p847_p8, %p846_p3 }
 0x167   : > { %p849_p0 = pnand %p848_p11, %p842_p10 }
 0x169   : > { %852 = shalt.err (!%p849_p0)
}
 0x16a   : > { %s913_s4 = smov 128   ;;  %s914_s18 = smov 8  }
 0x16b   : > { %730 = dma.vmem_to_hbm [thread:$0]  (%p1126_p9), %s1061_s29, 1024, %s1067_s12, %s593_s13, %s913_s4, %s913_s4, %s914_s18  }
 0x16c PF: > { %s624_s27 = sand.u32 1, %s887_s6   ;;  %p1127_p6 = scmp.ne.s32.totalorder %s1123_s21, 0 }
 0x16d   : > { %p1128_p13 = scmp.ge.s32.totalorder %s907_s11, 2  ;;  %s625_s30 = scalar_lea.sflag [#allocation5], %s624_s27 }
 0x16f   : > { %p737_p2 = pnand %p1128_p13, %p1127_p6 }
 0x171   : > { %882 = dma.done.wait (!%p737_p2), %s625_s30, 1024  }
 0x172   : > { %884 = vsyncadd (!%p737_p2), %s625_s30, 4294966272  ;;  %s17_s11 = sadd.s32 1, %s907_s11   ;;  %s1129_s6 = smov %s891_s7 }
 0x173   : > { %p14_p5 = scmp.ge.s32.totalorder %s17_s11, 4   ;;  %s1130_s7 = smov %s895_s8 }
 0x174   : > { %s1131_s8 = smov %s981_s20  ;;  %s1132_s9 = smov %s903_s10 }
 0x175   : > { %s1133_s10 = smov %s1135_s14  ;;  %16 = sbr.rel (!%p14_p5) target bundleno = 6 (0x6), region = 78 }
 0x17c   :  { %630 = vsyncpa [#allocation4], 1 }
 0x17d   :  { %632 = vsyncpa [#allocation4 + $0x1], 1 }
 0x17e   :  { %633 = vsyncpa [#allocation5], 1 }
 0x17f   :  { %635 = vsyncpa [#allocation5 + $0x1], 1 }

// kernel: tpu_custom_call.1
= control target key start
LH: loop header
LB: loop body
LE: loop exit
PB: predicated region body
PF: predicated region fallthrough
CT: control target
= control target key end

     0   :  { %6 = vsyncpa [#allocation3], 0  ;;  %s785_s0 = inlined_call_operand.hbm [shape: f32[2,8,2,8,8], index: 0, kind: input, shape index: {}]   ;;  %s786_s1 = inlined_call_operand.hbm [shape: f32[2,8,8,16], index: 1, kind: output, shape index: {}]  }
   0x1   :  { %8 = vsyncpa [#allocation3 + $0x1], 0 }
   0x2   :  { %9 = vsyncpa [#allocation4], 0 }
   0x3   :  { %11 = vsyncpa [#allocation4 + $0x1], 0  ;;  %s547_s6 = smov 0   ;;  %s549_s7 = smov 0  }
   0x4   :  { %s551_s8 = smov 0   ;;  %s553_s9 = smov 0  }
   0x5   :  { %s555_s10 = smov 0   ;;  %s557_s11 = smov 0  }
   0x6 LB: > { %s326_s12 = sadd.s32 4294967295, %s529_s11   ;;  %s327_s13 = sadd.s32 4294967294, %s529_s11   ;;  %s529_s11 = sphi %s557_s11, %s17_s11   ;;  %s525_s10 = sphi %s555_s10, %s801_s10   ;;  %s521_s9 = sphi %s553_s9, %s800_s9   ;;  %s517_s8 = sphi %s551_s8, %s799_s8   ;;  %s513_s7 = sphi %s549_s7, %s798_s7   ;;  %s509_s6 = sphi %s547_s6, %s797_s6  }
   0x7   : > { %s29_s14 = sadd.s32 1, %s525_s10  ;;  %s38_s15 = sadd.s32 1, %s517_s8 }
   0x8   : > { %p31_p0 = scmp.ge.s32.totalorder %s29_s14, 2  ;;  %p45_p1 = scmp.ne.s32.totalorder %s517_s8, %s513_s7 }
   0x9   : > { %p46_p2 = scmp.eq.s32.totalorder %s529_s11, 0  ;;  %p51_p3 = scmp.ne.s32.totalorder %s513_s7, %s509_s6 }
   0xa   : > { %s803_s14 = smov (%p31_p0, %s29_s14), 0  ;;  %p52_p5 = scmp.eq.s32.totalorder %s326_s12, 0 }
   0xb   : > { %p588_p4 = por %p46_p2, %p45_p1  ;;  %s33_s17 = ssub.s32 %s525_s10, %s803_s14 }
   0xc   : > { %p77_p6 = scmp.eq.s32.totalorder %s326_s12, 1  ;;  %p36_p7 = scmp.eq.s32.totalorder %s33_s17, 0 }
   0xd   : > { %p594_p8 = por %p52_p5, %p51_p3  ;;  %p83_p10 = scmp.eq.s32.totalorder %s327_s13, 1 }
   0xe   : > { %p598_p9 = por %p77_p6, %p45_p1  ;;  %p363_p13 = scmp.lt.s32.totalorder %s529_s11, 2 }
   0xf   : > { %s603_s20 = scalar_select %p36_p7, %s517_s8, %s38_s15  }
  0x10   : > { %s790_s19 = scalar_select %p598_p9, 1, 0 }
  0x11   : > { %p605_p11 = por %p83_p10, %p51_p3  ;;  %s103_s22 = sand.u32 1, %s517_s8  }
  0x12   : > { %s330_s23 = sshll.u32 %s103_s22, 7  ;;  %s349_s24 = sshll.u32 %s525_s10, 11 }
  0x13   : > { %s791_s21 = scalar_select %p605_p11, 1, 0 }
  0x14   : > { %s616_s27 = scalar_lea.hbm %s785_s0, %s349_s24  ;;  %s107_s28 = scalar_lea.vmem [#allocation2], %s330_s23 }
  0x15   : > { %s117_s29 = sshll.u32 %s107_s28, 4  ;;  %p622_p0 = pnand %p363_p13, %p588_p4  ;;  %s618_s29 = int_to_ptr.vmem [resolvable:$true] %s117_s29 }
  0x16   : > { %s627_s2 = scalar_lea.sflag [#allocation3], %s103_s22  ;;  %s417_s3 = scalar_lea.hbm %s616_s27, 2048 }
  0x17   : > { %p418_p2 = scmp.ne.s32.totalorder %s616_s27, %s417_s3  ;;  %p419_p3 = pneg %p622_p0 }
  0x18   : > { %s422_s12 = scalar_lea.hbm %s785_s0, 4096  ;;  %p423_p4 = scmp.lt.u32.totalorder %s616_s27, %s785_s0 }
  0x19   : > { %p420_p5 = pnand %p419_p3, %p418_p2  ;;  %p424_p7 = scmp.lt.u32.totalorder %s422_s12, %s417_s3 }
  0x1a   : > { %p426_p13 = scmp.lt.u32.totalorder %s417_s3, %s616_s27 }
  0x1b   : > { %p421_p6 = pneg %p420_p5  ;;  %p425_p10 = por %p424_p7, %p423_p4 }
  0x1d   : > { %p427_p12 = por %p426_p13, %p425_p10 }
  0x1f   : > { %p428_p1 = pnand %p427_p12, %p421_p6 }
  0x21   : > { %431 = shalt.err (!%p428_p1)
}
  0x22   : > { %s432_s16 = scalar_lea.vmem %s618_s29, 2048  ;;  %s531_s17 = smov [#allocation2]  }
  0x23   : > { %p433_p2 = scmp.ne.s32.totalorder %s618_s29, %s432_s16  ;;  %s437_s22 = sshll.u32 %s531_s17, 4  ;;  %s438_s22 = int_to_ptr.vmem [resolvable:$false] %s437_s22 }
  0x24   : > { %s439_s23 = scalar_lea.vmem %s438_s22, 4096  ;;  %p440_p9 = scmp.lt.s32.totalorder %s618_s29, %s438_s22 }
  0x25   : > { %p435_p5 = pnand %p433_p2, %p419_p3  ;;  %p441_p4 = scmp.lt.s32.totalorder %s439_s23, %s432_s16 }
  0x27   : > { %p436_p11 = pneg %p435_p5  ;;  %p442_p7 = por %p441_p4, %p440_p9 }
  0x29   : > { %p443_p10 = pnand %p442_p7, %p436_p11 }
  0x2b   : > { %446 = shalt.err (!%p443_p10)
}
  0x2c   : > { %s532_s24 = smov 128   ;;  %s533_s25 = smov 8  }
  0x2d   : > { %358 = dma.hbm_to_vmem [thread:$0]  (!%p622_p0), %s616_s27, 2048, %s618_s29, %s627_s2, %s532_s24, %s532_s24, %s533_s25  }
  0x2e   : > { %p125_p12 = scmp.lt.s32.totalorder %s529_s11, 3  ;;  %p793_p1 = scmp.ge.s32.totalorder %s529_s11, 1 }
  0x30   : > { %p126_p3 = pnand %p793_p1, %p125_p12 }
  0x31   : > { %s659_s26 = sand.u32 (!%p126_p3), 1, %s513_s7  }
  0x32   : > { %129 = sbr.rel (%p126_p3) target bundleno = 202 (0xca), region = 24  ;;  %s334_s28 = sshll.u32 (!%p126_p3), %s659_s26, 7 }
  0x33   : > { %s132_s3 = scalar_lea.sflag (!%p126_p3), [#allocation3], %s659_s26  ;;  %s663_s4 = scalar_lea.vmem (!%p126_p3), [#allocation2], %s334_s28 }
  0x39   : > { %500 = dma.done.wait (%p594_p8), %s132_s3, 2048  }
  0x3a   : > { %502 = vsyncadd (%p594_p8), %s132_s3, 4294965248  ;;  %s335_s27 = sshll.u32 %s659_s26, 6  ;;  %v338_v0 = vld [vmem:[%s663_s4 + $0x28] sm:$0xff]  ;;  %s534_s29 = smov 8   ;;  %vm164_vm0 = vcmask 64512   ;;  %v339_v2 = vld [vmem:[%s663_s4 + $0x38] sm:$0xff] }
  0x3b   : > { %v336_v1 = vld [vmem:[%s663_s4 + $0x8] sm:$0xff]  ;;  %194 = vrot.lane.b32.xlu1 %v338_v0, %s534_s29  ;;  %v337_v3 = vld [vmem:[%s663_s4 + $0x18] sm:$0xff]  ;;  %v158_v4 = vld [vmem:[%s663_s4 + $0x20] sm:$0xff]  ;;  %s679_s18 = scalar_lea.vmem [#allocation5], %s335_s27  ;;  %vm214_vm1 = vcmask 130112   ;;  %s350_s30 = sshll.u32 %s521_s9, 10 }
  0x3c   : > { %190 = vrot.lane.b32.xlu0 %v336_v1, %s534_s29  ;;  %v156_v5 = vld [vmem:[%s663_s4] sm:$0xff]  ;;  %v159_v6 = vld [vmem:[%s663_s4 + $0x30] sm:$0xff]  ;;  %167 = vst.msk [vmem:[%s679_s18 + $0x10] sm:$0xff] %vm164_vm0, %v158_v4  ;;  %s239_s2 = sshll.u32 %s679_s18, 4  ;;  %s729_s13 = scalar_lea.hbm %s786_s1, %s350_s30  ;;  %s731_s2 = int_to_ptr.vmem [resolvable:$true] %s239_s2 }
  0x3d   : > { %165 = vst.msk [vmem:[%s679_s18] sm:$0xff] %vm164_vm0, %v156_v5  ;;  %168 = vst.msk [vmem:[%s679_s18 + $0x18] sm:$0xff] %vm164_vm0, %v159_v6  ;;  %v157_v7 = vld [vmem:[%s663_s4 + $0x10] sm:$0xff]  ;;  %v160_v9 = vld [vmem:[%s663_s4 + $0x40] sm:$0xff]  ;;  %s224_s9 = scalar_lea.sflag [#allocation4], %s659_s26  ;;  %s447_s15 = scalar_lea.vmem %s731_s2, 1024 }
  0x3e   : > { %v161_v8 = vld [vmem:[%s663_s4 + $0x50] sm:$0xff]  ;;  %166 = vst.msk [vmem:[%s679_s18 + $0x8] sm:$0xff] %vm164_vm0, %v157_v7  ;;  %169 = vst.msk [vmem:[%s679_s18 + $0x20] sm:$0xff] %vm164_vm0, %v160_v9  ;;  %v162_v11 = vld [vmem:[%s663_s4 + $0x60] sm:$0xff]  ;;  %p448_p8 = scmp.ne.s32.totalorder %s731_s2, %s447_s15  ;;  %p794_p9 = scmp.ne.s32.totalorder %s790_s19, 0 }
  0x3f   : > { %196 = vrot.lane.b32.xlu1 %v339_v2, %s534_s29  ;;  %170 = vst.msk [vmem:[%s679_s18 + $0x28] sm:$0xff] %vm164_vm0, %v161_v8  ;;  %v163_v10 = vld [vmem:[%s663_s4 + $0x70] sm:$0xff]  ;;  %v341_v12 = vld [vmem:[%s663_s4 + $0x58] sm:$0xff]  ;;  %s535_s16 = smov [#allocation5]  }
  0x40   : > { %192 = vrot.lane.b32.xlu0 %v337_v3, %s534_s29  ;;  %v340_v13 = vld [vmem:[%s663_s4 + $0x48] sm:$0xff]  ;;  %172 = vst.msk [vmem:[%s679_s18 + $0x38] sm:$0xff] %vm164_vm0, %v163_v10  ;;  %171 = vst.msk [vmem:[%s679_s18 + $0x30] sm:$0xff] %vm164_vm0, %v162_v11  ;;  %p449_p11 = pnand %p448_p8, %p794_p9  ;;  %s451_s17 = sshll.u32 %s535_s16, 4  ;;  %s452_s17 = int_to_ptr.vmem [resolvable:$false] %s451_s17 }
  0x41   : > { %v343_v14 = vld [vmem:[%s663_s4 + $0x78] sm:$0xff]  ;;  %v342_v15 = vld [vmem:[%s663_s4 + $0x68] sm:$0xff]  ;;  %s453_s22 = scalar_lea.vmem %s452_s17, 2048  ;;  %p454_p6 = scmp.lt.s32.totalorder %s731_s2, %s452_s17 }
  0x42   : > { %p450_p0 = pneg %p449_p11  ;;  %p455_p13 = scmp.lt.s32.totalorder %s453_s22, %s447_s15 }
  0x43   : > { %200 = vrot.lane.b32.xlu1 %v341_v12, %s534_s29 }
  0x44   : > { %198 = vrot.lane.b32.xlu0 %v340_v13, %s534_s29  ;;  %p456_p2 = por %p455_p13, %p454_p6 }
  0x46   : > { %p457_p5 = pnand %p456_p2, %p450_p0 }
  0x47   : > { %204 = vrot.lane.b32.xlu1 %v343_v14, %s534_s29 }
  0x48   : > { %202 = vrot.lane.b32.xlu0 %v342_v15, %s534_s29 }
  0xad   : > { %v195_v16 = vpop.permute.xlu1 %194 }
  0xae   : > { %v191_v17 = vpop.permute.xlu0 %190  ;;  %217 = vst.msk [vmem:[%s679_s18 + $0x10] sm:$0xff] %vm214_vm1, %v195_v16 }
  0xaf   : > { %215 = vst.msk [vmem:[%s679_s18] sm:$0xff] %vm214_vm1, %v191_v17 }
  0xb1   : > { %v197_v18 = vpop.permute.xlu1 %196 }
  0xb2   : > { %v193_v19 = vpop.permute.xlu0 %192  ;;  %218 = vst.msk [vmem:[%s679_s18 + $0x18] sm:$0xff] %vm214_vm1, %v197_v18 }
  0xb3   : > { %216 = vst.msk [vmem:[%s679_s18 + $0x8] sm:$0xff] %vm214_vm1, %v193_v19 }
  0xb5   : > { %v201_v20 = vpop.permute.xlu1 %200 }
  0xb6   : > { %v199_v21 = vpop.permute.xlu0 %198  ;;  %220 = vst.msk [vmem:[%s679_s18 + $0x28] sm:$0xff] %vm214_vm1, %v201_v20 }
  0xb7   : > { %219 = vst.msk [vmem:[%s679_s18 + $0x20] sm:$0xff] %vm214_vm1, %v199_v21 }
  0xb9   : > { %v205_v22 = vpop.permute.xlu1 %204 }
  0xba   : > { %v203_v23 = vpop.permute.xlu0 %202  ;;  %222 = vst.msk [vmem:[%s679_s18 + $0x38] sm:$0xff] %vm214_vm1, %v205_v22 }
  0xbb   : > { %221 = vst.msk [vmem:[%s679_s18 + $0x30] sm:$0xff] %vm214_vm1, %v203_v23 }
  0xbc   : > { %460 = shalt.err (!%p457_p5)
}
  0xbd   : > { %s461_s23 = scalar_lea.hbm %s729_s13, 1024  ;;  %s465_s28 = scalar_lea.hbm %s786_s1, 2048 }
  0xbe   : > { %p462_p4 = scmp.ne.s32.totalorder %s729_s13, %s461_s23  ;;  %p466_p12 = scmp.lt.u32.totalorder %s729_s13, %s786_s1 }
  0xbf   : > { %p467_p1 = scmp.lt.u32.totalorder %s465_s28, %s461_s23  ;;  %p469_p8 = scmp.lt.u32.totalorder %s461_s23, %s729_s13 }
  0xc0   : > { %p463_p7 = pnand %p462_p4, %p794_p9 }
  0xc1   : > { %p468_p3 = por %p467_p1, %p466_p12 }
  0xc2   : > { %p464_p10 = pneg %p463_p7 }
  0xc3   : > { %p470_p11 = por %p469_p8, %p468_p3 }
  0xc5   : > { %p471_p0 = pnand %p470_p11, %p464_p10 }
  0xc7   : > { %474 = shalt.err (!%p471_p0)
}
  0xc8   : > { %s536_s27 = smov 128  }
  0xc9   : > { %353 = dma.vmem_to_hbm [thread:$0]  (%p794_p9), %s731_s2, 1024, %s729_s13, %s224_s9, %s536_s27, %s536_s27, %s534_s29  }
  0xca PF: > { %s254_s18 = sand.u32 1, %s509_s6   ;;  %p795_p6 = scmp.ne.s32.totalorder %s791_s21, 0 }
  0xcb   : > { %p796_p13 = scmp.ge.s32.totalorder %s529_s11, 2  ;;  %s255_s30 = scalar_lea.sflag [#allocation4], %s254_s18 }
  0xcd   : > { %p360_p2 = pnand %p796_p13, %p795_p6 }
  0xcf   : > { %504 = dma.done.wait (!%p360_p2), %s255_s30, 1024  }
  0xd0   : > { %506 = vsyncadd (!%p360_p2), %s255_s30, 4294966272  ;;  %s17_s11 = sadd.s32 1, %s529_s11   ;;  %s797_s6 = smov %s513_s7 }
  0xd1   : > { %p14_p5 = scmp.ge.s32.totalorder %s17_s11, 4   ;;  %s798_s7 = smov %s517_s8 }
  0xd2   : > { %s799_s8 = smov %s603_s20  ;;  %s800_s9 = smov %s525_s10 }
  0xd3   : > { %s801_s10 = smov %s803_s14  ;;  %16 = sbr.rel (!%p14_p5) target bundleno = 6 (0x6), region = 70 }
  0xda   :  { %260 = vsyncpa [#allocation3], 1 }
  0xdb   :  { %262 = vsyncpa [#allocation3 + $0x1], 1 }
  0xdc   :  { %263 = vsyncpa [#allocation4], 1 }
  0xdd   :  { %265 = vsyncpa [#allocation4 + $0x1], 1 }

</bundles_post_ra>
